<compile_context>
chip_gen: v7x
topology: tpu7x:2x2x1
jax: 0.10.0
libtpu: 0.0.40
codegen_flags: <defaults>
</compile_context>

<pallas_src>
import jax
import jax.numpy as jnp
from jax.experimental import pallas as pl
from jax.experimental.pallas import tpu as pltpu

LN_EPS = 1e-5


def _round_up(n, m):
    return ((n + m - 1) // m) * m


def _ln_linear_store(x, mean, var, w_ref, b_ref, o_ref):
    x_hat = (x - mean) * jax.lax.rsqrt(var + LN_EPS)
    out = jnp.dot(x_hat.astype(jnp.bfloat16), w_ref[...],
                  preferred_element_type=jnp.float32)
    o_ref[...] = (out + b_ref[...]).astype(o_ref.dtype)


def _prenorm_kernel_packed(x_ref, mmat_ref, w_ref, b_ref, o_ref):
    # x_ref:    (TM, L) tile; each 128-lane row holds R = L/D original rows.
    # mmat_ref: (L, L) block-diag of ones(D,D)/D -> per-segment mean,
    #           broadcast within the segment (all ops stay lane-aligned).
    # w_ref:    (L, L) bf16 block-diag folded weight (R copies of W').
    # b_ref:    (1, L) f32 tiled folded bias.
    x = x_ref[...].astype(jnp.float32)
    mmat = mmat_ref[...]
    mean = jnp.dot(x, mmat, preferred_element_type=jnp.float32)
    centered = x - mean
    var = jnp.dot(centered * centered, mmat, preferred_element_type=jnp.float32)
    _ln_linear_store(x, mean, var, w_ref, b_ref, o_ref)


def _prenorm_kernel_plain(x_ref, w_ref, b_ref, o_ref):
    # Fallback when D does not divide 128: one row per sublane row, stats via
    # cross-lane reductions (two-pass variance).
    x = x_ref[...].astype(jnp.float32)
    mean = jnp.mean(x, axis=-1, keepdims=True)
    centered = x - mean
    var = jnp.mean(centered * centered, axis=-1, keepdims=True)
    _ln_linear_store(x, mean, var, w_ref, b_ref, o_ref)


def prenorm(x, gamma, beta, w, b, *, tile_rows=1024):
    """x: (..., D). Returns Linear(LayerNorm(x)) with Linear = (w, b)."""
    orig_shape = x.shape
    D = orig_shape[-1]
    N = 1
    for s in orig_shape[:-1]:
        N *= s

    f32 = jnp.float32
    # Fold the LayerNorm affine (gamma, beta) into the Linear:
    #   (x_hat*gamma + beta) @ W + b == x_hat @ (gamma[:,None]*W) + (beta@W + b)
    w_f = gamma.astype(f32)[:, None] * w.astype(f32)            # (D, D)
    b_f = beta.astype(f32) @ w.astype(f32) + b.astype(f32)      # (D,)

    packed = (D <= 128) and (128 % D == 0)
    R = 128 // D if packed else 1
    L = R * D

    x2 = x.reshape(N, D)
    pad_rows = (-N) % R
    if pad_rows:
        # Rare: only when the row count isn't a multiple of the packing factor.
        x2 = jnp.concatenate([x2, jnp.zeros((pad_rows, D), x.dtype)], axis=0)
    M = (N + pad_rows) // R
    # Free contiguous reshape: R consecutive rows share one 128-lane row.
    x2 = x2.reshape(M, L)

    # Block-diagonal folded weight (bf16 MXU operand) and tiled folded bias.
    w_bd = jnp.kron(jnp.eye(R, dtype=f32), w_f).astype(jnp.bfloat16)   # (L, L)
    b_t = jnp.tile(b_f, R).reshape(1, L)                               # (1, L)

    # Row tile: as large as possible (within a few MiB of VMEM), but split into
    # >= 2 grid steps when there is enough work so v7x's 2 TensorCores can
    # both take a share of the "parallel" row axis.
    tile_rows = max(8, (tile_rows // 8) * 8)
    tile_rows = min(tile_rows, max(8, _round_up((4 * 1024 * 1024) // (L * 4), 8)))
    if M <= tile_rows:
        tm = _round_up(-(-M // 2), 8) if M >= 16 else M
    else:
        tm = tile_rows
    grid = (pl.cdiv(M, tm),)

    in_specs = [pl.BlockSpec((tm, L), lambda i: (i, 0))]
    args = [x2]
    if packed:
        mmat = jnp.kron(jnp.eye(R, dtype=f32),
                        jnp.full((D, D), 1.0 / D, dtype=f32))          # (L, L)
        in_specs.append(pl.BlockSpec((L, L), lambda i: (0, 0)))
        args.append(mmat)
        kernel = _prenorm_kernel_packed
    else:
        kernel = _prenorm_kernel_plain
    in_specs += [pl.BlockSpec((L, L), lambda i: (0, 0)),   # folded W (bf16)
                 pl.BlockSpec((1, L), lambda i: (0, 0))]   # folded bias (f32)
    args += [w_bd, b_t]

    itemsize = jnp.dtype(x.dtype).itemsize
    cost = pl.CostEstimate(
        flops=(6 if packed else 2) * M * L * L + 8 * M * L,
        transcendentals=M * L,
        bytes_accessed=M * L * 2 * itemsize + L * L * 6 + L * 4,
    )
    # Double-buffered x/out tiles (f32 worst case) + invariant operands + slack.
    vmem_limit = min(32 * 1024 * 1024,
                     4 * tm * L * 4 + 2 * (L * L * 6 + L * 4) + (4 << 20))

    out = pl.pallas_call(
        kernel,
        out_shape=jax.ShapeDtypeStruct((M, L), x.dtype),
        grid_spec=pltpu.PrefetchScalarGridSpec(
            num_scalar_prefetch=0,
            grid=grid,
            in_specs=in_specs,
            out_specs=pl.BlockSpec((tm, L), lambda i: (i, 0)),
        ),
        compiler_params=pltpu.CompilerParams(
            dimension_semantics=("parallel",),
            vmem_limit_bytes=vmem_limit,
        ),
        cost_estimate=cost,
    )(*args)

    out = out.reshape(M * R, D)   # free contiguous reshape back to rows
    if pad_rows:
        out = out[:N]
    return out.reshape(orig_shape)


def prenorm_ref(x, gamma, beta, w, b):
    mean = jnp.mean(x, axis=-1, keepdims=True)
    var = jnp.mean((x - mean) ** 2, axis=-1, keepdims=True)
    x_hat = (x - mean) / jnp.sqrt(var + LN_EPS)
    y = x_hat * gamma + beta
    return y @ w + b


if __name__ == "__main__":
    B, S, D = 2, 8, 32
    key = jax.random.PRNGKey(0)
    kx, kw, kb, kg, kbt = jax.random.split(key, 5)

    x = jax.random.normal(kx, (B, S, D), dtype=jnp.float32)

    # LayerNorm affine params (non-trivial to exercise the folding path).
    gamma = 1.0 + 0.1 * jax.random.normal(kg, (D,), dtype=jnp.float32)
    beta = 0.1 * jax.random.normal(kbt, (D,), dtype=jnp.float32)

    # fn = Linear(D, D) params (stored as (in, out); y = x @ w + b).
    w = jax.random.normal(kw, (D, D), dtype=jnp.float32) * 0.05
    b = jax.random.normal(kb, (D,), dtype=jnp.float32) * 0.05

    out = prenorm(x, gamma, beta, w, b)
    jax.block_until_ready(out)

    ref = prenorm_ref(x, gamma, beta, w, b)
    assert out.shape == (B, S, D)
    # bf16 matmul operands (f32 accumulation) -> relaxed tolerance.
    assert jnp.allclose(out, ref, atol=2e-2, rtol=2e-2), "mismatch vs reference"

    print("KERNEL_OK")
</pallas_src>

<mosaic_0001>
module attributes {stable_mosaic.version = 11 : i64} {
  func.func @_prenorm_kernel_packed(%arg0: i32, %arg1: memref<4x128xf32, #tpu.memory_space<vmem>>, %arg2: memref<128x128xf32, #tpu.memory_space<vmem>>, %arg3: memref<128x128xbf16, #tpu.memory_space<vmem>>, %arg4: memref<1x128xf32, #tpu.memory_space<vmem>>, %arg5: memref<4x128xf32, #tpu.memory_space<vmem>>) attributes {dimension_semantics = [#tpu.dimension_semantics<parallel>], iteration_bounds = array<i64: 1>, scalar_prefetch = 0 : i64, scratch_operands = 0 : i64, tpu.core_type = #tpu.core_type<tc>, window_params = [{transform_indices = @transform_0, window_bounds = array<i64: 4, 128>}, {pipeline_mode = #tpu.pipeline_mode<synchronous>, transform_indices = @transform_1, window_bounds = array<i64: 128, 128>}, {pipeline_mode = #tpu.pipeline_mode<synchronous>, transform_indices = @transform_2, window_bounds = array<i64: 128, 128>}, {pipeline_mode = #tpu.pipeline_mode<synchronous>, transform_indices = @transform_3, window_bounds = array<i64: 1, 128>}, {transform_indices = @transform_4, window_bounds = array<i64: 4, 128>}]} {
    %c0 = arith.constant 0 : index
    %c0_0 = arith.constant 0 : index
    %0 = vector.load %arg1[%c0, %c0_0] : memref<4x128xf32, #tpu.memory_space<vmem>>, vector<4x128xf32>
    %c0_1 = arith.constant 0 : index
    %c0_2 = arith.constant 0 : index
    %1 = vector.load %arg2[%c0_1, %c0_2] : memref<128x128xf32, #tpu.memory_space<vmem>>, vector<128x128xf32>
    %cst = arith.constant dense<0.000000e+00> : vector<4x128xf32>
    %2 = tpu.matmul %0, %1, %cst {dimension_numbers = #tpu.dot_dimension_numbers<[1], [0], [0], [1], [0, 0, 1, 1], [], []>} : vector<4x128xf32>, vector<128x128xf32>, vector<4x128xf32> -> vector<4x128xf32>
    %3 = arith.subf %0, %2 : vector<4x128xf32>
    %4 = arith.mulf %3, %3 : vector<4x128xf32>
    %cst_3 = arith.constant dense<0.000000e+00> : vector<4x128xf32>
    %5 = tpu.matmul %4, %1, %cst_3 {dimension_numbers = #tpu.dot_dimension_numbers<[1], [0], [0], [1], [0, 0, 1, 1], [], []>} : vector<4x128xf32>, vector<128x128xf32>, vector<4x128xf32> -> vector<4x128xf32>
    %6 = arith.subf %0, %2 : vector<4x128xf32>
    %cst_4 = arith.constant 9.99999974E-6 : f32
    %7 = vector.broadcast %cst_4 : f32 to vector<4x128xf32>
    %8 = arith.addf %5, %7 : vector<4x128xf32>
    %9 = math.rsqrt %8 : vector<4x128xf32>
    %10 = arith.mulf %6, %9 : vector<4x128xf32>
    %11 = arith.truncf %10 : vector<4x128xf32> to vector<4x128xbf16>
    %c0_5 = arith.constant 0 : index
    %c0_6 = arith.constant 0 : index
    %12 = vector.load %arg3[%c0_5, %c0_6] : memref<128x128xbf16, #tpu.memory_space<vmem>>, vector<128x128xbf16>
    %cst_7 = arith.constant dense<0.000000e+00> : vector<4x128xf32>
    %13 = tpu.matmul %11, %12, %cst_7 {dimension_numbers = #tpu.dot_dimension_numbers<[1], [0], [0], [1], [0, 0, 1, 1], [], []>} : vector<4x128xbf16>, vector<128x128xbf16>, vector<4x128xf32> -> vector<4x128xf32>
    %c0_8 = arith.constant 0 : index
    %c0_9 = arith.constant 0 : index
    %14 = vector.load %arg4[%c0_8, %c0_9] : memref<1x128xf32, #tpu.memory_space<vmem>>, vector<1x128xf32>
    %15 = vector.broadcast %14 : vector<1x128xf32> to vector<4x128xf32>
    %16 = arith.addf %13, %15 : vector<4x128xf32>
    %c0_10 = arith.constant 0 : index
    %c0_11 = arith.constant 0 : index
    %17 = vector.load %arg5[%c0_10, %c0_11] : memref<4x128xf32, #tpu.memory_space<vmem>>, vector<4x128xf32>
    tpu.vector_store %arg5[%c0_10, %c0_11], %16 {strides = array<i32>} : memref<4x128xf32, #tpu.memory_space<vmem>>, vector<4x128xf32>,
    return
  }
  func.func @transform_0(%arg0: i32) -> (i32, i32) {
    %c0_i32 = arith.constant 0 : i32
    %c0_i32_0 = arith.constant 0 : i32
    return %arg0, %c0_i32 : i32, i32
  }
  func.func @transform_1(%arg0: i32) -> (i32, i32) {
    %c0_i32 = arith.constant 0 : i32
    %c0_i32_0 = arith.constant 0 : i32
    %c0_i32_1 = arith.constant 0 : i32
    return %c0_i32, %c0_i32_0 : i32, i32
  }
  func.func @transform_2(%arg0: i32) -> (i32, i32) {
    %c0_i32 = arith.constant 0 : i32
    %c0_i32_0 = arith.constant 0 : i32
    %c0_i32_1 = arith.constant 0 : i32
    return %c0_i32, %c0_i32_0 : i32, i32
  }
  func.func @transform_3(%arg0: i32) -> (i32, i32) {
    %c0_i32 = arith.constant 0 : i32
    %c0_i32_0 = arith.constant 0 : i32
    %c0_i32_1 = arith.constant 0 : i32
    return %c0_i32, %c0_i32_0 : i32, i32
  }
  func.func @transform_4(%arg0: i32) -> (i32, i32) {
    %c0_i32 = arith.constant 0 : i32
    %c0_i32_0 = arith.constant 0 : i32
    return %arg0, %c0_i32 : i32, i32
  }
}

</mosaic_0001>

<bundles_post_ra>
// kernel: tpu_custom_call.1
= control target key start
LH: loop header
LB: loop body
LE: loop exit
PB: predicated region body
PF: predicated region fallthrough
CT: control target
= control target key end

     0   :  { %9 = vsyncpa [#allocation3], 0  ;;  %s754_s0 = inlined_call_operand.hbm [shape: f32[4,128], index: 0, kind: input, shape index: {}]   ;;  %s755_s1 = inlined_call_operand.hbm [shape: f32[128,128], index: 1, kind: input, shape index: {}]   ;;  %s756_s2 = inlined_call_operand.hbm [shape: bf16[128,128], index: 2, kind: input, shape index: {}]   ;;  %s757_s3 = inlined_call_operand.vmem [shape: f32[1,128], index: 3, kind: input, shape index: {}]   ;;  %s758_s4 = inlined_call_operand.hbm [shape: f32[4,128], index: 4, kind: output, shape index: {}]  }
   0x1   :  { %10 = vsyncpa [#allocation6], 0 }
   0x2   :  { %11 = vsyncpa [#allocation4], 0  ;;  %s653_s15 = smov [#allocation5]   ;;  %s559_s19 = scalar_lea.hbm %s755_s1, 2048 }
   0x3   :  { %s27_s16 = sshll.u32 %s653_s15, 4  ;;  %p560_p0 = scmp.ne.s32.totalorder %s755_s1, %s559_s19  ;;  %s28_s16 = int_to_ptr.vmem [resolvable:$true] %s27_s16 }
   0x4   :  { %p563_p1 = scmp.lt.u32.totalorder %s559_s19, %s755_s1 }
   0x6   :  { %p565_p2 = pnand %p563_p1, %p560_p0 }
   0x8   :  { %568 = shalt.err (!%p565_p2)
}
   0x9   :  { %s569_s24 = scalar_lea.vmem %s28_s16, 2048  ;;  %p574_p4 = scmp.lt.s32.totalorder %s28_s16, %s28_s16 }
   0xa   :  { %p570_p3 = scmp.ne.s32.totalorder %s28_s16, %s569_s24  ;;  %p575_p5 = scmp.lt.s32.totalorder %s569_s24, %s569_s24 }
   0xc   :  { %p576_p6 = por %p575_p5, %p574_p4 }
   0xe   :  { %p577_p7 = pnand %p576_p6, %p570_p3 }
  0x10   :  { %580 = shalt.err (!%p577_p7)
}
  0x11   :  { %s654_s25 = smov 128   ;;  %s655_s26 = smov 8  }
  0x12   :  { %33 = dma.hbm_to_vmem [thread:$0]  %s755_s1, 2048, %s28_s16, [#allocation6], %s654_s25, %s654_s25, %s655_s26  }
  0x13   :  { %s656_s29 = smov [#allocation2]   ;;  %s657_s5 = smov [#allocation7]  }
  0x14   :  { %s18_s30 = sshll.u32 %s656_s29, 4  ;;  %s39_s6 = sshll.u32 %s657_s5, 4  ;;  %s19_s30 = int_to_ptr.vmem [resolvable:$true] %s18_s30  ;;  %s40_s6 = int_to_ptr.vmem [resolvable:$true] %s39_s6 }
  0x15   :  { %s581_s9 = scalar_lea.hbm %s754_s0, 64 }
  0x16   :  { %p582_p8 = scmp.ne.s32.totalorder %s754_s0, %s581_s9  ;;  %p585_p9 = scmp.lt.u32.totalorder %s581_s9, %s754_s0 }
  0x18   :  { %p587_p10 = pnand %p585_p9, %p582_p8 }
  0x1a   :  { %590 = shalt.err (!%p587_p10)
}
  0x1b   :  { %s591_s1 = scalar_lea.vmem %s19_s30, 64  ;;  %p596_p12 = scmp.lt.s32.totalorder %s19_s30, %s19_s30 }
  0x1c   :  { %p592_p11 = scmp.ne.s32.totalorder %s19_s30, %s591_s1  ;;  %p597_p13 = scmp.lt.s32.totalorder %s591_s1, %s591_s1 }
  0x1e   :  { %p598_p0 = por %p597_p13, %p596_p12 }
  0x20   :  { %p599_p1 = pnand %p598_p0, %p592_p11 }
  0x22   :  { %602 = shalt.err (!%p599_p1)
}
  0x23   :  { %21 = dma.hbm_to_vmem [thread:$0]  %s754_s0, 64, %s19_s30, [#allocation3]  }
  0x24   :  { %s603_s18 = scalar_lea.hbm %s756_s2, 1024 }
  0x25   :  { %p604_p2 = scmp.ne.s32.totalorder %s756_s2, %s603_s18  ;;  %p607_p3 = scmp.lt.u32.totalorder %s603_s18, %s756_s2 }
  0x27   :  { %p609_p4 = pnand %p607_p3, %p604_p2 }
  0x29   :  { %612 = shalt.err (!%p609_p4)
}
  0x2a   :  { %s613_s23 = scalar_lea.vmem %s40_s6, 1024  ;;  %p618_p6 = scmp.lt.s32.totalorder %s40_s6, %s40_s6 }
  0x2b   :  { %p614_p5 = scmp.ne.s32.totalorder %s40_s6, %s613_s23  ;;  %p619_p7 = scmp.lt.s32.totalorder %s613_s23, %s613_s23 }
  0x2d   :  { %p620_p8 = por %p619_p7, %p618_p6 }
  0x2f   :  { %p621_p9 = pnand %p620_p8, %p614_p5 }
  0x31   :  { %624 = shalt.err (!%p621_p9)
}
  0x32   :  { %s658_s0 = smov 64   ;;  %s659_s24 = smov 4  }
  0x33   :  { %45 = dma.hbm_to_vmem [thread:$0]  %s756_s2, 1024, %s40_s6, [#allocation6], %s658_s0, %s658_s0, %s659_s24  }
  0x34   :  { %647 = dma.done.wait [#allocation3], 64  }
  0x35   :  { %648 = vsyncadd [#allocation3], 4294967232 }
  0x36   :  { %649 = dma.done.wait [#allocation6], 3072  }
  0x37   :  { %650 = vsyncadd [#allocation6], 4294964224  ;;  %v660_v0 = vmov 0.0|0.0   ;;  %vm661_vm0 = vmmov 0   ;;  %v662_v1 = vmov 0.0   ;;  %v59_v2 = vld [vmem:[#allocation5] sm:$0xff] }
  0x38   :  { %490 = vmatprep.subr.bf16.mxu1 %v660_v0  ;;  %432 = vmatprep.mubr.msk.f32.mxu1 %vm661_vm0, %v662_v1  ;;  %v60_v3 = vld [vmem:[#allocation5 + $0x8] sm:$0xff]  ;;  %v61_v4 = vld [vmem:[#allocation5 + $0x10] sm:$0xff]  ;;  %v62_v6 = vld [vmem:[#allocation5 + $0x18] sm:$0xff]  ;;  %s663_s28 = smov [#allocation8]  }
  0x39   :  { %470 = vmatprep.subr.bf16.mxu0 %v662_v1  ;;  %486 = vmatprep.mubr.msk.bf16.mxu0 %vm661_vm0, %v662_v1  ;;  %v491_v5 = vpack.c.bf16 %v60_v3, %v59_v2  ;;  %v494_v7 = vpack.c.bf16 %v62_v6, %v61_v4  ;;  %v63_v8 = vld [vmem:[#allocation5 + $0x20] sm:$0xff]  ;;  %v64_v9 = vld [vmem:[#allocation5 + $0x28] sm:$0xff]  ;;  %v65_v10 = vld [vmem:[#allocation5 + $0x30] sm:$0xff]  ;;  %s338_s29 = sshll.u32 %s663_s28, 4  ;;  %s339_s29 = int_to_ptr.vmem [resolvable:$true] %s338_s29 }
  0x3a   :  { %v66_v11 = vld [vmem:[#allocation5 + $0x38] sm:$0xff]  ;;  %v497_v12 = vpack.c.bf16 %v64_v9, %v63_v8  ;;  %v67_v14 = vld [vmem:[#allocation5 + $0x40] sm:$0xff]  ;;  %v68_v15 = vld [vmem:[#allocation5 + $0x48] sm:$0xff]  ;;  %s625_s30 = scalar_lea.vmem %s339_s29, 64  ;;  %p630_p11 = scmp.lt.s32.totalorder %s339_s29, %s339_s29 }
  0x3b   :  { %492 = vmatpush3.bf16.msra.mxu1 %v491_v5  ;;  %v500_v13 = vpack.c.bf16 %v66_v11, %v65_v10  ;;  %v503_v16 = vpack.c.bf16 %v68_v15, %v67_v14  ;;  %v69_v17 = vld [vmem:[#allocation5 + $0x50] sm:$0xff]  ;;  %v70_v18 = vld [vmem:[#allocation5 + $0x58] sm:$0xff]  ;;  %v71_v20 = vld [vmem:[#allocation5 + $0x60] sm:$0xff]  ;;  %p626_p10 = scmp.ne.s32.totalorder %s339_s29, %s625_s30  ;;  %p631_p12 = scmp.lt.s32.totalorder %s625_s30, %s625_s30 }
  0x3c   :  { %493 = vmatprep.subr.bf16.mxu1 %v660_v0  ;;  %v506_v19 = vpack.c.bf16 %v70_v18, %v69_v17  ;;  %v72_v21 = vld [vmem:[#allocation5 + $0x68] sm:$0xff]  ;;  %v73_v23 = vld [vmem:[#allocation5 + $0x70] sm:$0xff]  ;;  %v74_v24 = vld [vmem:[#allocation5 + $0x78] sm:$0xff] }
  0x3d   :  { %v509_v22 = vpack.c.bf16 %v72_v21, %v71_v20  ;;  %v512_v25 = vpack.c.bf16 %v74_v24, %v73_v23  ;;  %v58_v26 = vld [vmem:[#allocation2] sm:$0xf]  ;;  %v549_v27 = vld [vmem:[#allocation7] sm:$0xff]   ;;  %v550_v28 = vld [vmem:[#allocation7 + $0x8] sm:$0xff]   ;;  %p632_p13 = por %p631_p12, %p630_p11 }
  0x3e   :  { %471 = vmatpush3.bf16.msra.mxu0 %v549_v27  ;;  %v551_v29 = vld [vmem:[#allocation7 + $0x10] sm:$0xff]   ;;  %v552_v30 = vld [vmem:[#allocation7 + $0x18] sm:$0xff]   ;;  %v553_v35 = vld [vmem:[#allocation7 + $0x20] sm:$0xff]  }
  0x3f   :  { %495 = vmatpush3.bf16.msra.mxu1 %v494_v7  ;;  %472 = vmatprep.subr.bf16.mxu0 %v662_v1  ;;  %v554_v36 = vld [vmem:[#allocation7 + $0x28] sm:$0xff]   ;;  %v555_v37 = vld [vmem:[#allocation7 + $0x30] sm:$0xff]   ;;  %v556_v38 = vld [vmem:[#allocation7 + $0x38] sm:$0xff]   ;;  %p633_p0 = pnand %p632_p13, %p626_p10 }
  0x40   :  { %496 = vmatprep.subr.bf16.mxu1 %v660_v0  ;;  %v348_v45 = vld [vmem:[%s757_s3] ss:$0 sm:$0xff] }
  0x42   :  { %473 = vmatpush3.bf16.msra.mxu0 %v550_v28 }
  0x43   :  { %498 = vmatpush3.bf16.msra.mxu1 %v497_v12  ;;  %474 = vmatprep.subr.bf16.mxu0 %v662_v1 }
  0x44   :  { %499 = vmatprep.subr.bf16.mxu1 %v660_v0 }
  0x46   :  { %475 = vmatpush3.bf16.msra.mxu0 %v551_v29 }
  0x47   :  { %501 = vmatpush3.bf16.msra.mxu1 %v500_v13  ;;  %476 = vmatprep.subr.bf16.mxu0 %v662_v1 }
  0x48   :  { %502 = vmatprep.subr.bf16.mxu1 %v660_v0 }
  0x4a   :  { %477 = vmatpush3.bf16.msra.mxu0 %v552_v30 }
  0x4b   :  { %504 = vmatpush3.bf16.msra.mxu1 %v503_v16  ;;  %478 = vmatprep.subr.bf16.mxu0 %v662_v1 }
  0x4c   :  { %505 = vmatprep.subr.bf16.mxu1 %v660_v0 }
  0x4e   :  { %479 = vmatpush3.bf16.msra.mxu0 %v553_v35 }
  0x4f   :  { %507 = vmatpush3.bf16.msra.mxu1 %v506_v19  ;;  %480 = vmatprep.subr.bf16.mxu0 %v662_v1 }
  0x50   :  { %508 = vmatprep.subr.bf16.mxu1 %v660_v0 }
  0x52   :  { %481 = vmatpush3.bf16.msra.mxu0 %v554_v36 }
  0x53   :  { %510 = vmatpush3.bf16.msra.mxu1 %v509_v22  ;;  %482 = vmatprep.subr.bf16.mxu0 %v662_v1 }
  0x54   :  { %511 = vmatprep.subr.bf16.mxu1 %v660_v0 }
  0x56   :  { %483 = vmatpush3.bf16.msra.mxu0 %v555_v37 }
  0x57   :  { %513 = vmatpush3.bf16.msra.mxu1 %v512_v25  ;;  %484 = vmatprep.subr.bf16.mxu0 %v662_v1 }
  0x58   :  { %514 = vmatprep.subr.bf16.mxu1 %v660_v0 }
  0x5a   :  { %433 = vmatmul.mubr.f32.vlgmr.msra.gmra.mrb[0].mxu1 %v58_v26  ;;  %485 = vmatpush3.bf16.msra.mxu0 %v556_v38 }
  0x5b   :  { %516 = vmatpush3.bf16.msra.mxu1 %v491_v5  ;;  %467 = vmatprep.mubr.msk.f32.mxu1 %vm661_vm0, %v662_v1 }
  0x5c   :  { %517 = vmatprep.subr.bf16.mxu1 %v660_v0 }
  0x5f   :  { %519 = vmatpush3.bf16.msra.mxu1 %v494_v7 }
  0x60   :  { %520 = vmatprep.subr.bf16.mxu1 %v660_v0 }
  0x63   :  { %522 = vmatpush3.bf16.msra.mxu1 %v497_v12 }
  0x64   :  { %523 = vmatprep.subr.bf16.mxu1 %v660_v0 }
  0x67   :  { %525 = vmatpush3.bf16.msra.mxu1 %v500_v13 }
  0x68   :  { %526 = vmatprep.subr.bf16.mxu1 %v660_v0 }
  0x6b   :  { %528 = vmatpush3.bf16.msra.mxu1 %v503_v16 }
  0x6c   :  { %529 = vmatprep.subr.bf16.mxu1 %v660_v0 }
  0x6f   :  { %531 = vmatpush3.bf16.msra.mxu1 %v506_v19 }
  0x70   :  { %532 = vmatprep.subr.bf16.mxu1 %v660_v0 }
  0x73   :  { %534 = vmatpush3.bf16.msra.mxu1 %v509_v22 }
  0x74   :  { %535 = vmatprep.subr.bf16.mxu1 %v660_v0 }
  0x77   :  { %537 = vmatpush3.bf16.msra.mxu1 %v512_v25 }
 0x12d   :  { %v141_v31 = vpop.f32.mrb[0].mxu1 }
 0x12e   :  { %v145_v32 = vsub.f32 %v58_v26, %v141_v31  ;;  %v434_v33 = vpop.f32.mrb[1].mxu1 }
 0x130   :  { %v146_v34 = vmul.f32 %v145_v32, %v145_v32 }
 0x132   :  { %468 = vmatmul.mubr.f32.vlgmr.msra.gmra.mrb[2].mxu1 %v146_v34 }
 0x205   :  { %v213_v39 = vpop.f32.mrb[2].mxu1 }
 0x206   :  { %v214_v40 = vadd.f32 1e-05, %v213_v39  ;;  %v469_v41 = vpop.f32.mrb[3].mxu1 }
 0x208   :  { %557 = vrsqrt.f32 %v214_v40 }
 0x212   :  { %v558_v42 = vpop.eup %557 }
 0x213   :  { %v218_v43 = vmul.f32 %v558_v42, %v145_v32 }
 0x215   :  { %v219_v44 = vpack.c.bf16 %v218_v43, %v218_v43 }
 0x217   :  { %487 = vmatmul.mubr.bf16.vlgmr.msra.gmra.mrb[0].mxu0 %v219_v44 }
 0x2ea   :  { %v325_v46 = vpop.f32.mrb[0].mxu0 }
 0x2eb   :  { %v326_v47 = vadd.f32 %v348_v45, %v325_v46  ;;  %v488_v48 = vpop.f32.mrb[1].mxu0 }
 0x2ec   :  { %v328_v49 = vpop.f32.mrb[2].mxu0 }
 0x2ed   :  { %331 = vst [vmem:[#allocation8] sm:$0xf] %v326_v47  ;;  %v489_v50 = vpop.f32.mrb[3].mxu0 }
 0x2ee   :  { %636 = shalt.err (!%p633_p0)
}
 0x2ef   :  { %s637_s3 = scalar_lea.hbm %s758_s4, 64 }
 0x2f0   :  { %p638_p1 = scmp.ne.s32.totalorder %s758_s4, %s637_s3  ;;  %p641_p2 = scmp.lt.u32.totalorder %s637_s3, %s758_s4 }
 0x2f2   :  { %p643_p3 = pnand %p641_p2, %p638_p1 }
 0x2f4   :  { %646 = shalt.err (!%p643_p3)
}
 0x2f5   :  { %341 = dma.vmem_to_hbm [thread:$0]  %s339_s29, 64, %s758_s4, [#allocation4]  }
 0x2f6   :  { %651 = dma.done.wait [#allocation4], 64  }
 0x2f7   :  { %652 = vsyncadd [#allocation4], 4294967232 }
 0x2f8   :  { %345 = vsyncpa [#allocation3], 1 }
 0x2f9   :  { %346 = vsyncpa [#allocation6], 1 }
 0x2fa   :  { %347 = vsyncpa [#allocation4], 1 }

</bundles_post_ra>
